<compile_context>
chip_gen: v5e
topology: v5e:2x2
jax: 0.10.0
libtpu: 0.0.40
codegen_flags: <defaults>
</compile_context>

<pallas_src>
import jax
import jax.numpy as jnp
from jax.experimental import pallas as pl
from jax.experimental.pallas import tpu as pltpu

IN_FEATURES = 383  # fixed by the module: nn.Linear(383, embedding_size)


def _disease_embedding2_kernel(x_ref, cross_ref, wt_ref, b_ref, out_ref):
    # x_ref:     (tm, 383) tile of d_features       (VMEM)
    # cross_ref: (tm, E)   tile of crossfeatures    (VMEM)
    # wt_ref:    (383, E)  full transposed weight   (VMEM, resident)
    # b_ref:     (1, E)    bias row                 (VMEM, resident)
    # out_ref:   (tm, E)   output tile
    z = jnp.dot(
        x_ref[...],
        wt_ref[...],
        preferred_element_type=jnp.float32,
        precision=jax.lax.Precision.HIGHEST,
    )
    z = z + b_ref[...]                                   # broadcast bias over rows
    out_ref[...] = (0.9 * z + 0.1 * cross_ref[...]).astype(out_ref.dtype)


def disease_embedding2_forward(d_features, crossfeatures, weight, bias, *, tm=512):
    """Pallas equivalent of DiseaseEmbedding2.forward (inference).

    d_features:    (N, 383) float32
    crossfeatures: (N, E)   float32
    weight:        (E, 383) float32   (PyTorch Linear weight)
    bias:          (E,)     float32
    returns:       (N, E)   float32
    """
    N, K = d_features.shape
    E, K_w = weight.shape
    assert K == IN_FEATURES and K_w == IN_FEATURES
    assert crossfeatures.shape == (N, E)
    assert bias.shape == (E,)

    # Pick a big row tile (better HBM utilization) but never bigger than the
    # (8-row-aligned) padded problem; pad N up instead of asserting divisibility.
    tm = max(8, (min(tm, pl.cdiv(N, 8) * 8) // 8) * 8)
    n_pad = pl.cdiv(N, tm) * tm
    if n_pad != N:
        pad = n_pad - N
        d_features = jnp.pad(d_features, ((0, pad), (0, 0)))
        crossfeatures = jnp.pad(crossfeatures, ((0, pad), (0, 0)))

    wt = weight.T                      # (383, E) — transpose once on the host side
    b2 = bias.reshape(1, E)            # (1, E)

    out = pl.pallas_call(
        _disease_embedding2_kernel,
        out_shape=jax.ShapeDtypeStruct((n_pad, E), jnp.float32),
        grid_spec=pltpu.PrefetchScalarGridSpec(
            num_scalar_prefetch=0,
            grid=(n_pad // tm,),
            in_specs=[
                pl.BlockSpec((tm, K), lambda i: (i, 0)),   # d_features tile
                pl.BlockSpec((tm, E), lambda i: (i, 0)),   # crossfeatures tile
                pl.BlockSpec((K, E), lambda i: (0, 0)),    # W^T, resident
                pl.BlockSpec((1, E), lambda i: (0, 0)),    # bias, resident
            ],
            out_specs=pl.BlockSpec((tm, E), lambda i: (i, 0)),
        ),
        compiler_params=pltpu.CompilerParams(
            dimension_semantics=("parallel",),
        ),
    )(d_features, crossfeatures, wt, b2)

    return out[:N]


def _reference(d_features, crossfeatures, weight, bias):
    rep = (
        jnp.dot(d_features, weight.T, precision=jax.lax.Precision.HIGHEST) + bias
    )
    return 0.9 * rep + 0.1 * crossfeatures


if __name__ == "__main__":
    key = jax.random.PRNGKey(0)
    k_w, k_b, k_x, k_c = jax.random.split(key, 4)

    # Small shapes consistent with the module: N = 16 disease nodes,
    # 383 raw disease features, embedding_size = 64.
    N = 16
    E = 64

    # PyTorch Linear default init: U(-1/sqrt(fan_in), 1/sqrt(fan_in)).
    bound = 1.0 / jnp.sqrt(jnp.float32(IN_FEATURES))
    weight = jax.random.uniform(k_w, (E, IN_FEATURES), jnp.float32, -bound, bound)
    bias = jax.random.uniform(k_b, (E,), jnp.float32, -bound, bound)

    d_features = jax.random.normal(k_x, (N, IN_FEATURES), jnp.float32)
    crossfeatures = jax.random.normal(k_c, (N, E), jnp.float32)

    out = disease_embedding2_forward(d_features, crossfeatures, weight, bias)
    out = jax.block_until_ready(out)

    ref = _reference(d_features, crossfeatures, weight, bias)
    assert out.shape == (N, E), out.shape
    assert jnp.allclose(out, ref, atol=1e-4, rtol=1e-4), (
        jnp.max(jnp.abs(out - ref))
    )

    print("KERNEL_OK")
</pallas_src>

<mosaic_0001>
module attributes {stable_mosaic.version = 11 : i64} {
  func.func @_disease_embedding2_kernel(%arg0: i32, %arg1: memref<16x383xf32, #tpu.memory_space<vmem>>, %arg2: memref<16x64xf32, #tpu.memory_space<vmem>>, %arg3: memref<383x64xf32, #tpu.memory_space<vmem>>, %arg4: memref<1x64xf32, #tpu.memory_space<vmem>>, %arg5: memref<16x64xf32, #tpu.memory_space<vmem>>) attributes {dimension_semantics = [#tpu.dimension_semantics<parallel>], iteration_bounds = array<i64: 1>, scalar_prefetch = 0 : i64, scratch_operands = 0 : i64, tpu.core_type = #tpu.core_type<tc>, window_params = [{transform_indices = @transform_0, window_bounds = array<i64: 16, 383>}, {transform_indices = @transform_1, window_bounds = array<i64: 16, 64>}, {pipeline_mode = #tpu.pipeline_mode<synchronous>, transform_indices = @transform_2, window_bounds = array<i64: 383, 64>}, {pipeline_mode = #tpu.pipeline_mode<synchronous>, transform_indices = @transform_3, window_bounds = array<i64: 1, 64>}, {transform_indices = @transform_4, window_bounds = array<i64: 16, 64>}]} {
    %c0 = arith.constant 0 : index
    %c0_0 = arith.constant 0 : index
    %0 = vector.load %arg1[%c0, %c0_0] : memref<16x383xf32, #tpu.memory_space<vmem>>, vector<16x383xf32>
    %c0_1 = arith.constant 0 : index
    %c0_2 = arith.constant 0 : index
    %1 = vector.load %arg3[%c0_1, %c0_2] : memref<383x64xf32, #tpu.memory_space<vmem>>, vector<383x64xf32>
    %cst = arith.constant dense<0.000000e+00> : vector<16x64xf32>
    %2 = tpu.matmul %0, %1, %cst {dimension_numbers = #tpu.dot_dimension_numbers<[1], [0], [0], [1], [0, 0, 1, 1], [], []>, precision = #tpu.contract_precision<fp32>} : vector<16x383xf32>, vector<383x64xf32>, vector<16x64xf32> -> vector<16x64xf32>
    %c0_3 = arith.constant 0 : index
    %c0_4 = arith.constant 0 : index
    %3 = vector.load %arg4[%c0_3, %c0_4] : memref<1x64xf32, #tpu.memory_space<vmem>>, vector<1x64xf32>
    %4 = vector.broadcast %3 : vector<1x64xf32> to vector<16x64xf32>
    %5 = arith.addf %2, %4 : vector<16x64xf32>
    %cst_5 = arith.constant 0.899999976 : f32
    %6 = vector.broadcast %cst_5 : f32 to vector<16x64xf32>
    %7 = arith.mulf %6, %5 : vector<16x64xf32>
    %c0_6 = arith.constant 0 : index
    %c0_7 = arith.constant 0 : index
    %8 = vector.load %arg2[%c0_6, %c0_7] : memref<16x64xf32, #tpu.memory_space<vmem>>, vector<16x64xf32>
    %cst_8 = arith.constant 1.000000e-01 : f32
    %9 = vector.broadcast %cst_8 : f32 to vector<16x64xf32>
    %10 = arith.mulf %9, %8 : vector<16x64xf32>
    %11 = arith.addf %7, %10 : vector<16x64xf32>
    %c0_9 = arith.constant 0 : index
    %c0_10 = arith.constant 0 : index
    %12 = vector.load %arg5[%c0_9, %c0_10] : memref<16x64xf32, #tpu.memory_space<vmem>>, vector<16x64xf32>
    tpu.vector_store %arg5[%c0_9, %c0_10], %11 {strides = array<i32>} : memref<16x64xf32, #tpu.memory_space<vmem>>, vector<16x64xf32>,
    return
  }
  func.func @transform_0(%arg0: i32) -> (i32, i32) {
    %c0_i32 = arith.constant 0 : i32
    %c0_i32_0 = arith.constant 0 : i32
    return %arg0, %c0_i32 : i32, i32
  }
  func.func @transform_1(%arg0: i32) -> (i32, i32) {
    %c0_i32 = arith.constant 0 : i32
    %c0_i32_0 = arith.constant 0 : i32
    return %arg0, %c0_i32 : i32, i32
  }
  func.func @transform_2(%arg0: i32) -> (i32, i32) {
    %c0_i32 = arith.constant 0 : i32
    %c0_i32_0 = arith.constant 0 : i32
    %c0_i32_1 = arith.constant 0 : i32
    return %c0_i32, %c0_i32_0 : i32, i32
  }
  func.func @transform_3(%arg0: i32) -> (i32, i32) {
    %c0_i32 = arith.constant 0 : i32
    %c0_i32_0 = arith.constant 0 : i32
    %c0_i32_1 = arith.constant 0 : i32
    return %c0_i32, %c0_i32_0 : i32, i32
  }
  func.func @transform_4(%arg0: i32) -> (i32, i32) {
    %c0_i32 = arith.constant 0 : i32
    %c0_i32_0 = arith.constant 0 : i32
    return %arg0, %c0_i32 : i32, i32
  }
}

</mosaic_0001>

<bundles_post_ra>
// kernel: tpu_custom_call.1
= control target key start
LH: loop header
LB: loop body
LE: loop exit
PB: predicated region body
PF: predicated region fallthrough
CT: control target
= control target key end

     0   :  { %s2239_s0 = inlined_call_operand.vmem [shape: f32[16,383], index: 0, kind: input, shape index: {}]   ;;  %s2240_s1 = inlined_call_operand.vmem [shape: f32[16,64], index: 1, kind: input, shape index: {}]   ;;  %s2241_s2 = inlined_call_operand.vmem [shape: f32[383,64], index: 2, kind: input, shape index: {}]   ;;  %s2242_s3 = inlined_call_operand.vmem [shape: f32[1,64], index: 3, kind: input, shape index: {}]   ;;  %s2243_s4 = inlined_call_operand.hbm [shape: f32[16,64], index: 4, kind: output, shape index: {}]  }
   0x1   :  { %v39_v0 = vld [vmem:[%s2241_s2 + $0x78] sm:$0xff]  ;;  %v38_v1 = vld [vmem:[%s2241_s2 + $0x70] sm:$0xff]  ;;  %v37_v2 = vld [vmem:[%s2241_s2 + $0x68] sm:$0xff] }
   0x2   :  { %v1331_v3 = vand.u32 4294901760, %v39_v0  ;;  %v1333_v4 = vand.u32 4294901760, %v38_v1  ;;  %v1335_v5 = vand.u32 4294901760, %v37_v2  ;;  %v36_v6 = vld [vmem:[%s2241_s2 + $0x60] sm:$0xff]  ;;  %v35_v7 = vld [vmem:[%s2241_s2 + $0x58] sm:$0xff]  ;;  %v34_v8 = vld [vmem:[%s2241_s2 + $0x50] sm:$0xff] }
   0x3   :  { %v1346_v9 = vand.u32 4294901760, %v36_v6  ;;  %v1348_v10 = vand.u32 4294901760, %v35_v7  ;;  %v1350_v11 = vand.u32 4294901760, %v34_v8  ;;  %v33_v12 = vld [vmem:[%s2241_s2 + $0x48] sm:$0xff]  ;;  %v32_v13 = vld [vmem:[%s2241_s2 + $0x40] sm:$0xff]  ;;  %v31_v18 = vld [vmem:[%s2241_s2 + $0x38] sm:$0xff] }
   0x4   :  { %88 = vmatpush.msra.mxu0 %v1331_v3  ;;  %v1360_v14 = vsub.f32 %v39_v0, %v1331_v3  ;;  %v1363_v15 = vsub.f32 %v38_v1, %v1333_v4  ;;  %301 = vmatpush.msra.mxu3 %v1331_v3  ;;  %v1367_v16 = vsub.f32 %v37_v2, %v1335_v5  ;;  %v1369_v17 = vand.u32 4294901760, %v33_v12  ;;  %v30_v29 = vld [vmem:[%s2241_s2 + $0x30] sm:$0xff] }
   0x5   :  { %v1375_v19 = vsub.f32 %v36_v6, %v1346_v9  ;;  %v1378_v20 = vsub.f32 %v35_v7, %v1348_v10  ;;  %v1381_v21 = vsub.f32 %v34_v8, %v1350_v11  ;;  %v1383_v22 = vand.u32 4294901760, %v32_v13 }
   0x6   :  { %90 = vmatpush.msra.mxu0 %v1333_v4  ;;  %243 = vmatpush.msra.mxu2 %v1360_v14  ;;  %v138_v23 = vand.u32 4294901760, %v1360_v14  ;;  %v144_v24 = vand.u32 4294901760, %v1363_v15  ;;  %v2257_v25 = vand.u32 4294901760, %v1367_v16  ;;  %v1393_v27 = vsub.f32 %v33_v12, %v1369_v17 }
   0x7   :  { %303 = vmatpush.msra.mxu3 %v1333_v4  ;;  %v2256_v26 = vand.u32 4294901760, %v1375_v19  ;;  %v1395_v28 = vand.u32 4294901760, %v31_v18  ;;  %v2253_v33 = vand.u32 4294901760, %v1378_v20 }
   0x8   :  { %92 = vmatpush.msra.mxu0 %v1335_v5  ;;  %246 = vmatpush.msra.mxu2 %v1363_v15  ;;  %v139_v30 = vsub.f32 %v1360_v14, %v138_v23  ;;  %v145_v31 = vsub.f32 %v1363_v15, %v144_v24  ;;  %v151_v32 = vsub.f32 %v1367_v16, %v2257_v25 }
   0x9   :  { %9 = vsyncpa [#allocation3], 0  ;;  %305 = vmatpush.msra.mxu3 %v1335_v5  ;;  %v1414_v34 = vsub.f32 %v32_v13, %v1383_v22  ;;  %v2252_v35 = vand.u32 4294901760, %v1381_v21  ;;  %v29_v36 = vld [vmem:[%s2241_s2 + $0x28] sm:$0xff]  ;;  %v157_v39 = vsub.f32 %v1375_v19, %v2256_v26  ;;  %v1425_v40 = vand.u32 4294901760, %v30_v29  ;;  %v28_v42 = vld [vmem:[%s2241_s2 + $0x20] sm:$0xff] }
   0xa   :  { %94 = vmatpush.msra.mxu0 %v1346_v9  ;;  %249 = vmatpush.msra.mxu2 %v1367_v16  ;;  %v140_v37 = vand.u32 4294901760, %v139_v30  ;;  %v146_v38 = vand.u32 4294901760, %v145_v31  ;;  %v2250_v41 = vand.u32 4294901760, %v1393_v27  ;;  %v152_v43 = vand.u32 4294901760, %v151_v32  ;;  %v27_v48 = vld [vmem:[%s2241_s2 + $0x18] sm:$0xff]  ;;  %v26_v54 = vld [vmem:[%s2241_s2 + $0x10] sm:$0xff] }
   0xb   :  { %307 = vmatpush.msra.mxu3 %v1346_v9  ;;  %v163_v44 = vsub.f32 %v1378_v20, %v2253_v33  ;;  %v1437_v45 = vsub.f32 %v31_v18, %v1395_v28  ;;  %v1439_v46 = vand.u32 4294901760, %v29_v36  ;;  %v169_v47 = vsub.f32 %v1381_v21, %v2252_v35  ;;  %v55_v59 = vld [vmem:[%s2241_s2 + $0xf8] sm:$0xff]  ;;  %v25_v61 = vld [vmem:[%s2241_s2 + $0x8] sm:$0xff]  ;;  %v24_v2 = vld [vmem:[%s2241_s2] sm:$0xff]  ;;  %s1294_s22 = smov [#allocation2]   ;;  %s1220_s26 = sshll.u32 %s2243_s4, 4  ;;  %s1221_s26 = int_to_ptr.hbm [resolvable:$true] %s1220_s26 }
   0xc   :  { %96 = vmatpush.msra.mxu0 %v1348_v10  ;;  %141 = vmatpush.msra.mxu1 %v140_v37  ;;  %v158_v49 = vand.u32 4294901760, %v157_v39  ;;  %v1451_v50 = vsub.f32 %v30_v29, %v1425_v40  ;;  %v1453_v51 = vand.u32 4294901760, %v28_v42  ;;  %v2249_v52 = vand.u32 4294901760, %v1414_v34  ;;  %v54_v6 = vld [vmem:[%s2241_s2 + $0xf0] sm:$0xff]  ;;  %v53_v30 = vld [vmem:[%s2241_s2 + $0xe8] sm:$0xff]  ;;  %s1218_s23 = sshll.u32 %s1294_s22, 4  ;;  %s1219_s23 = int_to_ptr.vmem [resolvable:$true] %s1218_s23 }
   0xd   :  { %252 = vmatpush.msra.mxu2 %v1375_v19  ;;  %309 = vmatpush.msra.mxu3 %v1348_v10  ;;  %v175_v53 = vsub.f32 %v1393_v27, %v2250_v41  ;;  %v164_v55 = vand.u32 4294901760, %v163_v44  ;;  %v1466_v56 = vsub.f32 %v29_v36, %v1439_v46  ;;  %v1468_v57 = vand.u32 4294901760, %v27_v48  ;;  %v52_v44 = vld [vmem:[%s2241_s2 + $0xe0] sm:$0xff]  ;;  %s1296_s27 = smov 8  }
   0xe   :  { %98 = vmatpush.msra.mxu0 %v1350_v11  ;;  %147 = vmatpush.msra.mxu1 %v146_v38  ;;  %v2248_v58 = vand.u32 4294901760, %v1437_v45  ;;  %v170_v60 = vand.u32 4294901760, %v169_v47  ;;  %v181_v62 = vsub.f32 %v1414_v34, %v2249_v52  ;;  %v1484_v63 = vsub.f32 %v28_v42, %v1453_v51 }
   0xf   :  { %255 = vmatpush.msra.mxu2 %v1378_v20  ;;  %311 = vmatpush.msra.mxu3 %v1350_v11  ;;  %v1486_v0 = vand.u32 4294901760, %v26_v54  ;;  %v2246_v1 = vand.u32 4294901760, %v1451_v50  ;;  %v176_v7 = vand.u32 4294901760, %v175_v53  ;;  %v1497_v8 = vand.u32 4294901760, %v55_v59 }
  0x10   :  { %100 = vmatpush.msra.mxu0 %v1369_v17  ;;  %153 = vmatpush.msra.mxu1 %v152_v43  ;;  %v187_v12 = vsub.f32 %v1437_v45, %v2248_v58  ;;  %v1504_v13 = vsub.f32 %v27_v48, %v1468_v57  ;;  %v1506_v18 = vand.u32 4294901760, %v25_v61  ;;  %v2245_v29 = vand.u32 4294901760, %v1466_v56 }
  0x11   :  { %258 = vmatpush.msra.mxu2 %v1381_v21  ;;  %313 = vmatpush.msra.mxu3 %v1369_v17  ;;  %v1514_v31 = vand.u32 4294901760, %v24_v2  ;;  %v1516_v32 = vand.u32 4294901760, %v54_v6  ;;  %v182_v36 = vand.u32 4294901760, %v181_v62  ;;  %v193_v37 = vsub.f32 %v1451_v50, %v2246_v1 }
  0x12   :  { %102 = vmatpush.msra.mxu0 %v1383_v22  ;;  %159 = vmatpush.msra.mxu1 %v158_v49  ;;  %v1523_v38 = vsub.f32 %v26_v54, %v1486_v0  ;;  %v2244_v39 = vand.u32 4294901760, %v1484_v63  ;;  %v1529_v42 = vsub.f32 %v55_v59, %v1497_v8  ;;  %v1531_v43 = vand.u32 4294901760, %v53_v30  ;;  %v51_v59 = vld [vmem:[%s2241_s2 + $0xd8] sm:$0xff] }
  0x13   :  { %261 = vmatpush.msra.mxu2 %v1393_v27  ;;  %315 = vmatpush.msra.mxu3 %v1383_v22  ;;  %v188_v47 = vand.u32 4294901760, %v187_v12  ;;  %v199_v48 = vsub.f32 %v1466_v56, %v2245_v29  ;;  %v1541_v49 = vsub.f32 %v25_v61, %v1506_v18  ;;  %v2247_v53 = vand.u32 4294901760, %v1504_v13  ;;  %v50_v12 = vld [vmem:[%s2241_s2 + $0xd0] sm:$0xff] }
  0x14   :  { %104 = vmatpush.msra.mxu0 %v1395_v28  ;;  %165 = vmatpush.msra.mxu1 %v164_v55  ;;  %v1547_v54 = vsub.f32 %v24_v2, %v1514_v31  ;;  %v1550_v55 = vsub.f32 %v54_v6, %v1516_v32  ;;  %v205_v61 = vsub.f32 %v1484_v63, %v2244_v39  ;;  %v2251_v62 = vand.u32 4294901760, %v1523_v38 }
  0x15   :  { %264 = vmatpush.msra.mxu2 %v1414_v34  ;;  %317 = vmatpush.msra.mxu3 %v1395_v28  ;;  %v2254_v2 = vand.u32 4294901760, %v1529_v42  ;;  %v1566_v6 = vsub.f32 %v53_v30, %v1531_v43  ;;  %v2255_v39 = vand.u32 4294901760, %v1541_v49  ;;  %v1576_v29 = vand.u32 4294901760, %v51_v59 }
  0x16   :  { %106 = vmatpush.msra.mxu0 %v1425_v40  ;;  %171 = vmatpush.msra.mxu1 %v170_v60  ;;  %v194_v60 = vand.u32 4294901760, %v193_v37  ;;  %v211_v37 = vsub.f32 %v1504_v13, %v2247_v53  ;;  %v2258_v30 = vand.u32 4294901760, %v1550_v55  ;;  %v2259_v1 = vand.u32 4294901760, %v1547_v54 }
  0x17   :  { %267 = vmatpush.msra.mxu2 %v1437_v45  ;;  %319 = vmatpush.msra.mxu3 %v1425_v40  ;;  %v217_v53 = vsub.f32 %v1523_v38, %v2251_v62  ;;  %v1592_v52 = vand.u32 4294901760, %v50_v12  ;;  %v511_v41 = vsub.f32 %v1529_v42, %v2254_v2  ;;  %v223_v62 = vsub.f32 %v1541_v49, %v2255_v39 }
  0x18   :  { %108 = vmatpush.msra.mxu0 %v1439_v46  ;;  %177 = vmatpush.msra.mxu1 %v176_v7  ;;  %v1560_v7 = vand.u32 4294901760, %v52_v44  ;;  %v1608_v35 = vsub.f32 %v51_v59, %v1576_v29  ;;  %v517_v2 = vsub.f32 %v1550_v55, %v2258_v30  ;;  %vm83_vm0 = vcmask 1046528  }
  0x19   :  { %270 = vmatpush.msra.mxu2 %v1451_v50  ;;  %321 = vmatpush.msra.mxu3 %v1439_v46  ;;  %v218_v59 = vand.u32 4294901760, %v217_v53  ;;  %v1626_v26 = vsub.f32 %v50_v12, %v1592_v52  ;;  %v512_v30 = vand.u32 4294901760, %v511_v41  ;;  %v46_v53 = vld [vmem:[%s2241_s2 + $0xb0] sm:$0xff]  ;;  %v224_v12 = vand.u32 4294901760, %v223_v62 }
  0x1a   :  { %110 = vmatpush.msra.mxu0 %v1453_v51  ;;  %183 = vmatpush.msra.mxu1 %v182_v36  ;;  %v200_v36 = vand.u32 4294901760, %v199_v48  ;;  %v206_v48 = vand.u32 4294901760, %v205_v61  ;;  %v1590_v58 = vsub.f32 %v52_v44, %v1560_v7  ;;  %v48_v61 = vld [vmem:[%s2241_s2 + $0xc0] sm:$0xff]  ;;  %v212_v44 = vand.u32 4294901760, %v211_v37  ;;  %2267 = vst [vmem:[#allocation5_spill] sm:$0xff] %v1608_v35  ;;  %v47_v37 = vld [vmem:[%s2241_s2 + $0xb8] sm:$0xff] }
  0x1b   :  { %273 = vmatpush.msra.mxu2 %v1466_v56  ;;  %323 = vmatpush.msra.mxu3 %v1453_v51  ;;  %v1628_v25 = vand.u32 4294901760, %v48_v61  ;;  %v1644_v14 = vand.u32 4294901760, %v47_v37  ;;  %v1660_v15 = vand.u32 4294901760, %v46_v53  ;;  %vm76_vm1 = vcmask 1039360  }
  0x1c   :  { %112 = vmatpush.msra.mxu0 %v1468_v57  ;;  %189 = vmatpush.msra.mxu1 %v188_v47  ;;  %v49_v47 = vld [vmem:[%s2241_s2 + $0xc8] sm:$0xff]  ;;  %v2268_v62 = vand.u32 4294901760, %v1590_v58  ;;  %vm1211_vm2 = vcmask 523264  }
  0x1d   :  { %276 = vmatpush.msra.mxu2 %v1484_v63  ;;  %325 = vmatpush.msra.mxu3 %v1468_v57  ;;  %v1610_v33 = vand.u32 4294901760, %v49_v47 }
  0x1e   :  { %114 = vmatpush.msra.mxu0 %v1486_v0  ;;  %195 = vmatpush.msra.mxu1 %v194_v60  ;;  %v2260_v60 = vand.u32 4294901760, %v1566_v6 }
  0x1f   :  { %279 = vmatpush.msra.mxu2 %v1504_v13  ;;  %327 = vmatpush.msra.mxu3 %v1486_v0  ;;  %v1642_v39 = vsub.f32 %v49_v47, %v1610_v33  ;;  %v529_v47 = vsub.f32 %v1590_v58, %v2268_v62  ;;  %v1688_v62 = vsub.f32 %v46_v53, %v1660_v15 }
  0x20   :  { %116 = vmatpush.msra.mxu0 %v1506_v18  ;;  %201 = vmatpush.msra.mxu1 %v200_v36  ;;  %v229_v36 = vsub.f32 %v1547_v54, %v2259_v1  ;;  %v523_v1 = vsub.f32 %v1566_v6, %v2260_v60  ;;  %v1670_v60 = vsub.f32 %v47_v37, %v1644_v14  ;;  %v2272_v37 = vand.u32 4294901760, %v1626_v26 }
  0x21   :  { %282 = vmatpush.msra.mxu2 %v1523_v38  ;;  %329 = vmatpush.msra.mxu3 %v1506_v18  ;;  %v2274_v53 = vand.u32 4294901760, %v1642_v39 }
  0x22   :  { %118 = vmatpush.msra.mxu0 %v1514_v31  ;;  %207 = vmatpush.msra.mxu1 %v206_v48  ;;  %v230_v41 = vand.u32 4294901760, %v229_v36  ;;  %v1658_v48 = vsub.f32 %v48_v61, %v1628_v25  ;;  %v2270_v36 = vand.u32 4294901760, %v1608_v35 }
  0x23   :  { %285 = vmatpush.msra.mxu2 %v1541_v49  ;;  %331 = vmatpush.msra.mxu3 %v1514_v31 }
  0x24   :  { %348 = vmatpush.msrb.mxu0 %v138_v23  ;;  %213 = vmatpush.msra.mxu1 %v212_v44  ;;  %v518_v23 = vand.u32 4294901760, %v517_v2  ;;  %v45_v44 = vld [vmem:[%s2241_s2 + $0xa8] sm:$0xff]  ;;  %v524_v2 = vand.u32 4294901760, %v523_v1  ;;  %v18_v1 = vld [vmem:[%s2239_s0] sm:$0xff] }
  0x25   :  { %288 = vmatpush.msra.mxu2 %v1547_v54  ;;  %513 = vmatpush.msrb.mxu3 %v512_v30  ;;  %v1672_v61 = vand.u32 4294901760, %v45_v44  ;;  %v2271_v30 = vand.u32 4294901760, %v1375_v19 }
  0x26   :  { %352 = vmatpush.msrb.mxu0 %v144_v24  ;;  %219 = vmatpush.msra.mxu1 %v218_v59  ;;  %v2269_v24 = vand.u32 4294901760, %v1367_v16  ;;  %v535_v59 = vsub.f32 %v1608_v35, %v2270_v36  ;;  %v44_v16 = vld [vmem:[%s2241_s2 + $0xa0] sm:$0xff]  ;;  %v2265_v36 = vand.u32 4294901760, %v1658_v48  ;;  %v2273_v35 = vand.u32 4294901760, %v1378_v20 }
  0x27   :  { %460 = vmatpush.msrb.mxu2 %v1497_v8  ;;  %519 = vmatpush.msrb.mxu3 %v518_v23  ;;  %v1693_v19 = vand.u32 4294901760, %v44_v16  ;;  %v1695_v23 = vand.u32 4294901760, %v18_v1  ;;  %v2263_v20 = vand.u32 4294901760, %v1670_v60 }
  0x28   :  { %356 = vmatpush.msrb.mxu0 %v2269_v24  ;;  %225 = vmatpush.msra.mxu1 %v224_v12  ;;  %v530_v12 = vand.u32 4294901760, %v529_v47  ;;  %v541_v24 = vsub.f32 %v1626_v26, %v2272_v37  ;;  %v536_v47 = vand.u32 4294901760, %v535_v59  ;;  %v42_v37 = vld [vmem:[%s2241_s2 + $0x90] sm:$0xff]  ;;  %v553_v59 = vsub.f32 %v1658_v48, %v2265_v36 }
  0x29   :  { %462 = vmatpush.msrb.mxu2 %v1516_v32  ;;  %525 = vmatpush.msrb.mxu3 %v524_v2 }
  0x2a   :  { %360 = vmatpush.msrb.mxu0 %v2271_v30  ;;  %231 = vmatpush.msra.mxu1 %v230_v41  ;;  %v43_v41 = vld [vmem:[%s2241_s2 + $0x98] sm:$0xff]  ;;  %v547_v30 = vsub.f32 %v1642_v39, %v2274_v53  ;;  %v542_v2 = vand.u32 4294901760, %v541_v24 }
  0x2b   :  { %464 = vmatpush.msrb.mxu2 %v1531_v43  ;;  %531 = vmatpush.msrb.mxu3 %v530_v12  ;;  %v1719_v53 = vand.u32 4294901760, %v43_v41  ;;  %v41_v12 = vld [vmem:[%s2241_s2 + $0x88] sm:$0xff] }
  0x2c   :  { %364 = vmatpush.msrb.mxu0 %v2273_v35  ;;  %419 = vmatpush.msrb.mxu1 %v1331_v3  ;;  %v1706_v3 = vsub.f32 %v45_v44, %v1672_v61  ;;  %v2275_v35 = vand.u32 4294901760, %v1381_v21  ;;  %v2264_v44 = vand.u32 4294901760, %v1688_v62  ;;  %v2276_v21 = vand.u32 4294901760, %v1393_v27 }
  0x2d   :  { %466 = vmatpush.msrb.mxu2 %v1560_v7  ;;  %537 = vmatpush.msrb.mxu3 %v536_v47  ;;  %v548_v24 = vand.u32 4294901760, %v547_v30  ;;  %v559_v27 = vsub.f32 %v1670_v60, %v2263_v20  ;;  %v1748_v30 = vsub.f32 %v43_v41, %v1719_v53  ;;  %v1750_v20 = vand.u32 4294901760, %v41_v12 }
  0x2e   :  { %368 = vmatpush.msrb.mxu0 %v2275_v35  ;;  %421 = vmatpush.msrb.mxu1 %v1333_v4  ;;  %v1725_v4 = vsub.f32 %v18_v1, %v1695_v23  ;;  %v1728_v35 = vsub.f32 %v44_v16, %v1693_v19  ;;  %v2277_v1 = vand.u32 4294901760, %v1414_v34  ;;  %v554_v16 = vand.u32 4294901760, %v553_v59  ;;  %v40_v34 = vld [vmem:[%s2241_s2 + $0x80] sm:$0xff] }
  0x2f   :  { %468 = vmatpush.msrb.mxu2 %v1576_v29  ;;  %543 = vmatpush.msrb.mxu3 %v542_v2  ;;  %v565_v47 = vsub.f32 %v1688_v62, %v2264_v44  ;;  %v2278_v2 = vand.u32 4294901760, %v1437_v45  ;;  %v2279_v45 = vand.u32 4294901760, %v1451_v50 }
  0x30   :  { %372 = vmatpush.msrb.mxu0 %v2276_v21  ;;  %423 = vmatpush.msrb.mxu1 %v1335_v5  ;;  %v2266_v5 = vand.u32 4294901760, %v1706_v3  ;;  %v1738_v21 = vand.u32 4294901760, %v42_v37  ;;  %v576_v59 = vand.u32 4294901760, %v1728_v35  ;;  %v121_v41 = vand.u32 4294901760, %v1725_v4 }
  0x31   :  { %470 = vmatpush.msrb.mxu2 %v1592_v52  ;;  %549 = vmatpush.msrb.mxu3 %v548_v24  ;;  %v566_v24 = vand.u32 4294901760, %v565_v47 }
  0x32   :  { %376 = vmatpush.msrb.mxu0 %v2277_v1  ;;  %425 = vmatpush.msrb.mxu1 %v1346_v9  ;;  %v21_v9 = vld [vmem:[%s2239_s0 + $0x18] sm:$0xff]  ;;  %v560_v1 = vand.u32 4294901760, %v559_v27  ;;  %v571_v44 = vsub.f32 %v1706_v3, %v2266_v5  ;;  %v1768_v36 = vsub.f32 %v42_v37, %v1738_v21  ;;  %v582_v27 = vand.u32 4294901760, %v1748_v30 }
  0x33   :  { %472 = vmatpush.msrb.mxu2 %v1610_v33  ;;  %555 = vmatpush.msrb.mxu3 %v554_v16  ;;  %v1780_v5 = vsub.f32 %v41_v12, %v1750_v20  ;;  %v2280_v37 = vand.u32 4294901760, %v1466_v56  ;;  %v122_v50 = vsub.f32 %v1725_v4, %v121_v41  ;;  %v2281_v12 = vand.u32 4294901760, %v1484_v63  ;;  %v19_v63 = vld [vmem:[%s2239_s0 + $0x8] sm:$0xff] }
  0x34   :  { %380 = vmatpush.msrb.mxu0 %v2278_v2  ;;  %427 = vmatpush.msrb.mxu1 %v1348_v10  ;;  %v1773_v10 = vand.u32 4294901760, %v40_v34  ;;  %v1775_v2 = vand.u32 4294901760, %v21_v9  ;;  %v572_v16 = vand.u32 4294901760, %v571_v44  ;;  %v588_v47 = vand.u32 4294901760, %v1768_v36 }
  0x35   :  { %474 = vmatpush.msrb.mxu2 %v1628_v25  ;;  %561 = vmatpush.msrb.mxu3 %v560_v1  ;;  %v583_v1 = vsub.f32 %v1748_v30, %v582_v27  ;;  %v594_v44 = vand.u32 4294901760, %v1780_v5 }
  0x36   :  { %384 = vmatpush.msrb.mxu0 %v2279_v45  ;;  %429 = vmatpush.msrb.mxu1 %v1350_v11  ;;  %v577_v11 = vsub.f32 %v1728_v35, %v576_v59  ;;  %v128_v56 = vsub.f32 %v21_v9, %v1775_v2  ;;  %v123_v9 = vand.u32 4294901760, %v122_v50  ;;  %v589_v45 = vsub.f32 %v1768_v36, %v588_v47 }
  0x37   :  { %476 = vmatpush.msrb.mxu2 %v1644_v14  ;;  %567 = vmatpush.msrb.mxu3 %v566_v24  ;;  %v2283_v24 = vand.u32 4294901760, %v1523_v38  ;;  %v2284_v38 = vand.u32 4294901760, %v1541_v49  ;;  %v2285_v49 = vand.u32 4294901760, %v1547_v54  ;;  %v2286_v54 = vand.u32 4294901760, %v1529_v42 }
  0x38   :  { %388 = vmatpush.msrb.mxu0 %v2280_v37  ;;  %431 = vmatpush.msrb.mxu1 %v1369_v17  ;;  %v1796_v17 = vsub.f32 %v40_v34, %v1773_v10  ;;  %v578_v34 = vand.u32 4294901760, %v577_v11  ;;  %v595_v11 = vsub.f32 %v1780_v5, %v594_v44 }
  0x39   :  { %478 = vmatpush.msrb.mxu2 %v1660_v15  ;;  %573 = vmatpush.msrb.mxu3 %v572_v16 }
  0x3a   :  { %392 = vmatpush.msrb.mxu0 %v2281_v12  ;;  %433 = vmatpush.msrb.mxu1 %v1383_v22  ;;  %v2282_v22 = vand.u32 4294901760, %v1504_v13  ;;  %v600_v37 = vand.u32 4294901760, %v1796_v17  ;;  %v129_v13 = vand.u32 4294901760, %v128_v56  ;;  %v1817_v12 = vand.u32 4294901760, %v19_v63 }
  0x3b   :  { %480 = vmatpush.msrb.mxu2 %v1672_v61  ;;  %579 = vmatpush.msrb.mxu3 %v578_v34 }
  0x3c   :  { %396 = vmatpush.msrb.mxu0 %v2282_v22  ;;  %435 = vmatpush.msrb.mxu1 %v1395_v28  ;;  %v584_v28 = vand.u32 4294901760, %v583_v1  ;;  %v130_v50 = vsub.f32 %v128_v56, %v129_v13  ;;  %v1832_v16 = vsub.f32 %v19_v63, %v1817_v12  ;;  %v66_v22 = vld [vmem:[%s2241_s2 + $0x150] sm:$0xff] }
  0x3d   :  { %482 = vmatpush.msrb.mxu2 %v1693_v19  ;;  %124 = vmatmul.f32.vlgmr.msra.gmra.mxu0 %v123_v9 }
  0x3e   :  { %291 = vmatmul.f32.vlgmr.msra.gmra.mxu2 %v1725_v4  ;;  %400 = vmatpush.msrb.mxu0 %v2283_v24  ;;  %v590_v4 = vand.u32 4294901760, %v589_v45  ;;  %v131_v1 = vand.u32 4294901760, %v130_v50  ;;  %v493_v63 = vand.u32 4294901760, %v1832_v16  ;;  %v62_v50 = vld [vmem:[%s2241_s2 + $0x130] sm:$0xff] }
  0x3f   :  { %437 = vmatpush.msrb.mxu1 %v1425_v40  ;;  %484 = vmatpush.msrb.mxu2 %v1719_v53  ;;  %v601_v40 = vsub.f32 %v1796_v17, %v600_v37 }
  0x40   :  { %335 = vmatmul.f32.vlgmr.msra.gmra.mxu3 %v121_v41  ;;  %404 = vmatpush.msrb.mxu0 %v2284_v38  ;;  %v596_v41 = vand.u32 4294901760, %v595_v11 }
  0x41   :  { %439 = vmatpush.msrb.mxu1 %v1439_v46  ;;  %486 = vmatpush.msrb.mxu2 %v1738_v21  ;;  %v602_v46 = vand.u32 4294901760, %v601_v40 }
  0x42   :  { %585 = vmatpush.msrb.mxu3 %v584_v28  ;;  %233 = vmatmul.f32.vlgmr.msra.gmra.mxu1 %v1695_v23 }
  0x43   :  { %408 = vmatpush.msrb.mxu0 %v2285_v49  ;;  %441 = vmatpush.msrb.mxu1 %v1453_v51  ;;  %v494_v51 = vsub.f32 %v1832_v16, %v493_v63  ;;  %v61_v49 = vld [vmem:[%s2241_s2 + $0x128] sm:$0xff] }
  0x44   :  { %488 = vmatpush.msrb.mxu2 %v1750_v20  ;;  %591 = vmatpush.msrb.mxu3 %v590_v4 }
  0x45   :  { %615 = vmatpush.msra.mxu0 %v1529_v42  ;;  %443 = vmatpush.msrb.mxu1 %v1468_v57  ;;  %v2287_v57 = vand.u32 4294901760, %v1550_v55  ;;  %v495_v42 = vand.u32 4294901760, %v494_v51 }
  0x46   :  { %490 = vmatpush.msrb.mxu2 %v1773_v10  ;;  %597 = vmatpush.msrb.mxu3 %v596_v41 }
  0x47   :  { %296 = vmatmul.f32.gmra.mxu2 %v128_v56  ;;  %618 = vmatpush.msra.mxu0 %v1550_v55  ;;  %v22_v55 = vld [vmem:[%s2239_s0 + $0x20] sm:$0xff]  ;;  %v2289_v56 = vld [vmem:[#allocation5_spill] sm:$0xff] }
  0x48   :  { %720 = vmatpush.msra.mxu2 %v2286_v54  ;;  %445 = vmatpush.msrb.mxu1 %v1486_v0  ;;  %v2288_v0 = vand.u32 4294901760, %v1566_v6  ;;  %v2036_v54 = vand.u32 4294901760, %v62_v50 }
  0x49   :  { %603 = vmatpush.msrb.mxu3 %v602_v46  ;;  %132 = vmatmul.f32.gmra.mxu0 %v131_v1 }
  0x4a   :  { %341 = vmatmul.f32.gmra.mxu3 %v129_v13  ;;  %621 = vmatpush.msra.mxu0 %v1566_v6  ;;  %v1870_v6 = vand.u32 4294901760, %v22_v55 }
  0x4b   :  { %724 = vmatpush.msra.mxu2 %v2287_v57  ;;  %791 = vmatpush.msra.mxu3 %v1497_v8 }
  0x4c   :  { %447 = vmatpush.msrb.mxu1 %v1506_v18  ;;  %624 = vmatpush.msra.mxu0 %v1590_v58  ;;  %v2290_v18 = vand.u32 4294901760, %v1590_v58  ;;  %v2292_v58 = vand.u32 4294901760, %v1626_v26 }
  0x4d   :  { %237 = vmatmul.f32.gmra.mxu1 %v1775_v2  ;;  %728 = vmatpush.msra.mxu2 %v2288_v0 }
  0x4e   :  { %793 = vmatpush.msra.mxu3 %v1516_v32  ;;  %449 = vmatpush.msrb.mxu1 %v1514_v31  ;;  %v2291_v31 = vand.u32 4294901760, %v2289_v56 }
  0x4f   :  { %627 = vmatpush.msra.mxu0 %v2289_v56  ;;  %732 = vmatpush.msra.mxu2 %v2290_v18  ;;  %v59_v56 = vld [vmem:[%s2241_s2 + $0x118] sm:$0xff] }
  0x50   :  { %673 = vmatpush.msra.mxu1 %v1497_v8  ;;  %795 = vmatpush.msra.mxu3 %v1531_v43  ;;  %v1883_v8 = vsub.f32 %v22_v55, %v1870_v6 }
  0x51   :  { %496 = vmatmul.f32.vlgmr.msrb.gmra.mxu2 %v495_v42  ;;  %630 = vmatpush.msra.mxu0 %v1626_v26  ;;  %v2050_v42 = vand.u32 4294901760, %v61_v49 }
  0x52   :  { %675 = vmatpush.msra.mxu1 %v1516_v32  ;;  %736 = vmatpush.msra.mxu2 %v2291_v31  ;;  %v2293_v32 = vand.u32 4294901760, %v1642_v39  ;;  %v501_v26 = vand.u32 4294901760, %v1883_v8 }
  0x53   :  { %797 = vmatpush.msra.mxu3 %v1560_v7  ;;  %410 = vmatmul.f32.vlgmr.msrb.gmra.mxu0 %v1695_v23 }
  0x54   :  { %605 = vmatmul.f32.vlgmr.msrb.gmra.mxu3 %v1817_v12  ;;  %633 = vmatpush.msra.mxu0 %v1642_v39  ;;  %v2295_v39 = vand.u32 4294901760, %v1670_v60 }
  0x55   :  { %677 = vmatpush.msra.mxu1 %v1531_v43  ;;  %740 = vmatpush.msra.mxu2 %v2292_v58  ;;  %v2294_v43 = vand.u32 4294901760, %v1658_v48 }
  0x56   :  { %799 = vmatpush.msra.mxu3 %v1576_v29  ;;  %451 = vmatmul.f32.vlgmr.msrb.gmra.mxu1 %v1695_v23 }
  0x57   :  { %636 = vmatpush.msra.mxu0 %v1658_v48  ;;  %679 = vmatpush.msra.mxu1 %v1560_v7  ;;  %v502_v7 = vsub.f32 %v1883_v8, %v501_v26  ;;  %v2297_v48 = vand.u32 4294901760, %v1706_v3 }
  0x58   :  { %744 = vmatpush.msra.mxu2 %v2293_v32  ;;  %801 = vmatpush.msra.mxu3 %v1592_v52  ;;  %v935_v32 = vsub.f32 %v62_v50, %v2036_v54 }
  0x59   :  { %639 = vmatpush.msra.mxu0 %v1670_v60  ;;  %681 = vmatpush.msra.mxu1 %v1576_v29  ;;  %v71_v29 = vld [vmem:[%s2241_s2 + $0x178] sm:$0x7f] }
  0x5a   :  { %748 = vmatpush.msra.mxu2 %v2294_v43  ;;  %803 = vmatpush.msra.mxu3 %v1610_v33  ;;  %v85_v60 = vsel %vm83_vm0, %v71_v29, 0 }
  0x5b   :  { %642 = vmatpush.msra.mxu0 %v1688_v62  ;;  %683 = vmatpush.msra.mxu1 %v1592_v52  ;;  %v2296_v52 = vand.u32 4294901760, %v1688_v62  ;;  %v70_v62 = vld [vmem:[%s2241_s2 + $0x170] sm:$0xff] }
  0x5c   :  { %752 = vmatpush.msra.mxu2 %v2295_v39  ;;  %805 = vmatpush.msra.mxu3 %v1628_v25  ;;  %v1937_v23 = vand.u32 4294901760, %v70_v62 }
  0x5d   :  { %645 = vmatpush.msra.mxu0 %v1706_v3  ;;  %685 = vmatpush.msra.mxu1 %v1610_v33  ;;  %v503_v33 = vand.u32 4294901760, %v502_v7 }
  0x5e   :  { %756 = vmatpush.msra.mxu2 %v2296_v52  ;;  %807 = vmatpush.msra.mxu3 %v1644_v14  ;;  %v941_v52 = vsub.f32 %v61_v49, %v2050_v42 }
  0x5f   :  { %648 = vmatpush.msra.mxu0 %v1728_v35  ;;  %687 = vmatpush.msra.mxu1 %v1628_v25  ;;  %v1927_v25 = vand.u32 4294901760, %v85_v60  ;;  %v68_v35 = vld [vmem:[%s2241_s2 + $0x160] sm:$0xff] }
  0x60   :  { %760 = vmatpush.msra.mxu2 %v2297_v48  ;;  %809 = vmatpush.msra.mxu3 %v1660_v15  ;;  %v58_v48 = vld [vmem:[%s2241_s2 + $0x110] sm:$0xff] }
  0x61   :  { %414 = vmatmul.f32.gmra.mxu0 %v1775_v2  ;;  %689 = vmatpush.msra.mxu1 %v1644_v14  ;;  %v69_v14 = vld [vmem:[%s2241_s2 + $0x168] sm:$0xff] }
  0x62   :  { %651 = vmatpush.msra.mxu0 %v1748_v30  ;;  %764 = vmatpush.msra.mxu2 %v576_v59  ;;  %v1943_v3 = vand.u32 4294901760, %v69_v14  ;;  %v67_v30 = vld [vmem:[%s2241_s2 + $0x158] sm:$0xff]  ;;  %v1960_v59 = vand.u32 4294901760, %v68_v35 }
  0x63   :  { %811 = vmatpush.msra.mxu3 %v1672_v61  ;;  %691 = vmatpush.msra.mxu1 %v1660_v15  ;;  %v881_v15 = vsub.f32 %v85_v60, %v1927_v25  ;;  %v2072_v60 = vand.u32 4294901760, %v59_v56 }
  0x64   :  { %654 = vmatpush.msra.mxu0 %v1768_v36  ;;  %768 = vmatpush.msra.mxu2 %v582_v27  ;;  %v893_v27 = vsub.f32 %v69_v14, %v1943_v3 }
  0x65   :  { %813 = vmatpush.msra.mxu3 %v1693_v19  ;;  %504 = vmatmul.f32.gmra.mxu2 %v503_v33  ;;  %v1964_v36 = vand.u32 4294901760, %v881_v15 }
  0x66   :  { %657 = vmatpush.msra.mxu0 %v1780_v5  ;;  %693 = vmatpush.msra.mxu1 %v1672_v61  ;;  %v887_v61 = vsub.f32 %v70_v62, %v1937_v23  ;;  %v1991_v34 = vand.u32 4294901760, %v893_v27 }
  0x67   :  { %772 = vmatpush.msra.mxu2 %v588_v47  ;;  %815 = vmatpush.msra.mxu3 %v1719_v53  ;;  %v1967_v47 = vand.u32 4294901760, %v67_v30 }
  0x68   :  { %609 = vmatmul.f32.gmra.mxu3 %v1870_v6  ;;  %660 = vmatpush.msra.mxu0 %v1796_v17  ;;  %v1980_v5 = vand.u32 4294901760, %v887_v61  ;;  %v883_v17 = vsub.f32 %v881_v15, %v1964_v36  ;;  %v895_v4 = vsub.f32 %v893_v27, %v1991_v34 }
  0x69   :  { %695 = vmatpush.msra.mxu1 %v1693_v19  ;;  %776 = vmatpush.msra.mxu2 %v594_v44  ;;  %v65_v19 = vld [vmem:[%s2241_s2 + $0x148] sm:$0xff]  ;;  %v1984_v44 = vand.u32 4294901760, %v66_v22  ;;  %v905_v9 = vsub.f32 %v67_v30, %v1967_v47 }
  0x6a   :  { %817 = vmatpush.msra.mxu3 %v1738_v21  ;;  %455 = vmatmul.f32.gmra.mxu1 %v1775_v2  ;;  %v899_v2 = vsub.f32 %v68_v35, %v1960_v59  ;;  %v1995_v45 = vand.u32 4294901760, %v65_v19  ;;  %v889_v24 = vsub.f32 %v887_v61, %v1980_v5  ;;  %v884_v11 = vand.u32 4294901760, %v883_v17 }
  0x6b   :  { %663 = vmatmul.f32.vlgmr.msra.gmra.mxu0 %v1832_v16  ;;  %697 = vmatpush.msra.mxu1 %v1719_v53  ;;  %v64_v53 = vld [vmem:[%s2241_s2 + $0x140] sm:$0xff]  ;;  %v911_v28 = vsub.f32 %v66_v22, %v1984_v44  ;;  %v2013_v38 = vand.u32 4294901760, %v905_v9  ;;  %v896_v51 = vand.u32 4294901760, %v895_v4  ;;  %v2098_v22 = vand.u32 4294901760, %v941_v52 }
  0x6c   :  { %832 = vmatpush.msrb.mxu0 %v1927_v25  ;;  %780 = vmatpush.msra.mxu2 %v600_v37  ;;  %v2001_v37 = vand.u32 4294901760, %v64_v53  ;;  %v2008_v13 = vand.u32 4294901760, %v899_v2  ;;  %v917_v40 = vsub.f32 %v65_v19, %v1995_v45 }
  0x6d   :  { %819 = vmatpush.msra.mxu3 %v1750_v20  ;;  %699 = vmatpush.msra.mxu1 %v1738_v21  ;;  %v63_v21 = vld [vmem:[%s2241_s2 + $0x138] sm:$0xff]  ;;  %v2033_v46 = vand.u32 4294901760, %v911_v28  ;;  %v907_v16 = vsub.f32 %v905_v9, %v2013_v38 }
  0x6e   :  { %987 = vmatpush.msrb.mxu2 %v881_v15  ;;  %834 = vmatpush.msrb.mxu0 %v1937_v23  ;;  %v2026_v41 = vsub.f32 %v64_v53, %v2001_v37  ;;  %v901_v1 = vsub.f32 %v899_v2, %v2008_v13  ;;  %v2042_v57 = vand.u32 4294901760, %v917_v40  ;;  %v2083_v15 = vand.u32 4294901760, %v935_v32 }
  0x6f   :  { %821 = vmatpush.msra.mxu3 %v1773_v10  ;;  %782 = vmatmul.f32.vlgmr.msra.gmra.mxu2 %v1817_v12  ;;  %v913_v58 = vsub.f32 %v911_v28, %v2033_v46  ;;  %v908_v39 = vand.u32 4294901760, %v907_v16 }
  0x70   :  { %836 = vmatpush.msrb.mxu0 %v1943_v3  ;;  %990 = vmatpush.msrb.mxu2 %v887_v61  ;;  %v2054_v55 = vand.u32 4294901760, %v2026_v41  ;;  %v902_v31 = vand.u32 4294901760, %v901_v1  ;;  %v919_v29 = vsub.f32 %v917_v40, %v2042_v57  ;;  %v2089_v61 = vand.u32 4294901760, %v58_v48 }
  0x71   :  { %1045 = vmatpush.msrb.mxu3 %v1927_v25  ;;  %701 = vmatpush.msra.mxu1 %v1750_v20  ;;  %v2021_v20 = vand.u32 4294901760, %v63_v21  ;;  %v914_v14 = vand.u32 4294901760, %v913_v58  ;;  %v937_v17 = vsub.f32 %v935_v32, %v2083_v15 }
  0x72   :  { %823 = vmatmul.f32.vlgmr.msra.gmra.mxu3 %v1817_v12  ;;  %838 = vmatpush.msrb.mxu0 %v1960_v59  ;;  %v890_v12 = vand.u32 4294901760, %v889_v24  ;;  %v925_v62 = vsub.f32 %v2026_v41, %v2054_v55  ;;  %v920_v30 = vand.u32 4294901760, %v919_v29  ;;  %v56_v24 = vld [vmem:[%s2241_s2 + $0x100] sm:$0xff] }
  0x73   :  { %993 = vmatpush.msrb.mxu2 %v893_v27  ;;  %1047 = vmatpush.msrb.mxu3 %v1937_v23  ;;  %v929_v0 = vsub.f32 %v63_v21, %v2021_v20  ;;  %v23_v27 = vld [vmem:[%s2239_s0 + $0x28] sm:$0xff]  ;;  %v938_v49 = vand.u32 4294901760, %v937_v17 }
  0x74   :  { %703 = vmatpush.msra.mxu1 %v1773_v10  ;;  %840 = vmatpush.msrb.mxu0 %v1967_v47  ;;  %v20_v10 = vld [vmem:[%s2239_s0 + $0x10] sm:$0xff]  ;;  %v81_v21 = vsel %vm76_vm1, %v23_v27, 0 }
  0x75   :  { %707 = vmatmul.f32.vlgmr.msra.gmra.mxu1 %v493_v63  ;;  %996 = vmatpush.msrb.mxu2 %v899_v2  ;;  %v60_v63 = vld [vmem:[%s2241_s2 + $0x120] sm:$0xff]  ;;  %v78_v18 = vsel %vm76_vm1, %v20_v10, 0  ;;  %v2069_v7 = vand.u32 4294901760, %v929_v0  ;;  %v926_v2 = vand.u32 4294901760, %v925_v62 }
  0x76   :  { %885 = vmatpush.msrb.mxu1 %v884_v11  ;;  %1049 = vmatpush.msrb.mxu3 %v1943_v3  ;;  %v2064_v43 = vand.u32 4294901760, %v60_v63  ;;  %v2077_v33 = vand.u32 4294901760, %v78_v18 }
  0x77   :  { %842 = vmatpush.msrb.mxu0 %v1984_v44  ;;  %999 = vmatpush.msrb.mxu2 %v905_v9  ;;  %v931_v19 = vsub.f32 %v929_v0, %v2069_v7 }
  0x78   :  { %891 = vmatpush.msrb.mxu1 %v890_v12  ;;  %1051 = vmatpush.msrb.mxu3 %v1960_v59  ;;  %v947_v35 = vsub.f32 %v60_v63, %v2064_v43  ;;  %v2125_v12 = vand.u32 4294901760, %v56_v24 }
  0x79   :  { %668 = vmatmul.f32.gmra.mxu0 %v1883_v8  ;;  %786 = vmatmul.f32.gmra.mxu2 %v1870_v6  ;;  %v953_v8 = vsub.f32 %v59_v56, %v2072_v60  ;;  %v932_v11 = vand.u32 4294901760, %v931_v19 }
  0x7a   :  { %844 = vmatpush.msrb.mxu0 %v1995_v45  ;;  %897 = vmatpush.msrb.mxu1 %v896_v51  ;;  %v2108_v53 = vand.u32 4294901760, %v947_v35  ;;  %v971_v56 = vsub.f32 %v56_v24, %v2125_v12 }
  0x7b   :  { %1002 = vmatpush.msrb.mxu2 %v911_v28  ;;  %1053 = vmatpush.msrb.mxu3 %v1967_v47  ;;  %v959_v28 = vsub.f32 %v58_v48, %v2089_v61  ;;  %v2120_v4 = vand.u32 4294901760, %v953_v8 }
  0x7c   :  { %827 = vmatmul.f32.gmra.mxu3 %v1870_v6  ;;  %846 = vmatpush.msrb.mxu0 %v2001_v37  ;;  %v57_v6 = vld [vmem:[%s2241_s2 + $0x108] sm:$0xff]  ;;  %v949_v1 = vsub.f32 %v947_v35, %v2108_v53 }
  0x7d   :  { %903 = vmatpush.msrb.mxu1 %v902_v31  ;;  %1005 = vmatpush.msrb.mxu2 %v917_v40  ;;  %v2111_v9 = vand.u32 4294901760, %v57_v6  ;;  %v943_v40 = vsub.f32 %v941_v52, %v2098_v22  ;;  %v2133_v51 = vand.u32 4294901760, %v959_v28 }
  0x7e   :  { %1055 = vmatpush.msrb.mxu3 %v1984_v44  ;;  %713 = vmatmul.f32.gmra.mxu1 %v501_v26  ;;  %v2103_v26 = vsub.f32 %v78_v18, %v2077_v33  ;;  %v950_v31 = vand.u32 4294901760, %v949_v1 }
  0x7f   :  { %848 = vmatpush.msrb.mxu0 %v2021_v20  ;;  %909 = vmatpush.msrb.mxu1 %v908_v39  ;;  %v965_v10 = vsub.f32 %v57_v6, %v2111_v9  ;;  %v944_v16 = vand.u32 4294901760, %v943_v40 }
  0x80   :  { %1008 = vmatpush.msrb.mxu2 %v2026_v41  ;;  %1057 = vmatpush.msrb.mxu3 %v1995_v45  ;;  %v865_v50 = vand.u32 4294901760, %v2103_v26  ;;  %v2127_v41 = vand.u32 4294901760, %v81_v21 }
  0x81   :  { %850 = vmatpush.msrb.mxu0 %v2036_v54  ;;  %915 = vmatpush.msrb.mxu1 %v914_v14  ;;  %v2142_v58 = vand.u32 4294901760, %v965_v10 }
  0x82   :  { %1011 = vmatpush.msrb.mxu2 %v929_v0  ;;  %1059 = vmatpush.msrb.mxu3 %v2001_v37  ;;  %v866_v63 = vsub.f32 %v2103_v26, %v865_v50  ;;  %v955_v0 = vsub.f32 %v953_v8, %v2120_v4  ;;  %v872_v18 = vsub.f32 %v81_v21, %v2127_v41 }
  0x83   :  { %852 = vmatpush.msrb.mxu0 %v2050_v42  ;;  %921 = vmatpush.msrb.mxu1 %v920_v30  ;;  %v967_v62 = vsub.f32 %v965_v10, %v2142_v58 }
  0x84   :  { %1014 = vmatpush.msrb.mxu2 %v935_v32  ;;  %1061 = vmatpush.msrb.mxu3 %v2021_v20  ;;  %v961_v32 = vsub.f32 %v959_v28, %v2133_v51  ;;  %v867_v39 = vand.u32 4294901760, %v866_v63  ;;  %v956_v29 = vand.u32 4294901760, %v955_v0  ;;  %v873_v48 = vand.u32 4294901760, %v872_v18 }
  0x85   :  { %854 = vmatpush.msrb.mxu0 %v2064_v43  ;;  %927 = vmatpush.msrb.mxu1 %v926_v2  ;;  %v968_v6 = vand.u32 4294901760, %v967_v62 }
  0x86   :  { %1017 = vmatpush.msrb.mxu2 %v941_v52  ;;  %1063 = vmatpush.msrb.mxu3 %v2036_v54  ;;  %v2148_v52 = vand.u32 4294901760, %v971_v56  ;;  %v962_v14 = vand.u32 4294901760, %v961_v32  ;;  %v874_v30 = vsub.f32 %v872_v18, %v873_v48 }
  0x87   :  { %856 = vmatpush.msrb.mxu0 %v2072_v60  ;;  %933 = vmatpush.msrb.mxu1 %v932_v11 }
  0x88   :  { %1020 = vmatpush.msrb.mxu2 %v947_v35  ;;  %1065 = vmatpush.msrb.mxu3 %v2050_v42  ;;  %v973_v35 = vsub.f32 %v971_v56, %v2148_v52  ;;  %v875_v19 = vand.u32 4294901760, %v874_v30 }
  0x89   :  { %858 = vmatpush.msrb.mxu0 %v2089_v61  ;;  %939 = vmatpush.msrb.mxu1 %v938_v49 }
  0x8a   :  { %1023 = vmatpush.msrb.mxu2 %v953_v8  ;;  %1067 = vmatpush.msrb.mxu3 %v2064_v43  ;;  %v974_v27 = vand.u32 4294901760, %v973_v35 }
  0x8b   :  { %860 = vmatpush.msrb.mxu0 %v2111_v9  ;;  %945 = vmatpush.msrb.mxu1 %v944_v16 }
  0x8c   :  { %1026 = vmatpush.msrb.mxu2 %v959_v28  ;;  %1069 = vmatpush.msrb.mxu3 %v2072_v60 }
  0x8d   :  { %862 = vmatpush.msrb.mxu0 %v2125_v12  ;;  %951 = vmatpush.msrb.mxu1 %v950_v31 }
  0x8e   :  { %1029 = vmatpush.msrb.mxu2 %v965_v10  ;;  %1071 = vmatpush.msrb.mxu3 %v2089_v61 }
  0x8f   :  { %868 = vmatmul.f32.vlgmr.msrb.gmra.mxu0 %v867_v39  ;;  %957 = vmatpush.msrb.mxu1 %v956_v29 }
  0x90   :  { %1092 = vmatpush.msra.mxu0 %v1964_v36  ;;  %1032 = vmatpush.msrb.mxu2 %v971_v56 }
  0x91   :  { %1073 = vmatpush.msrb.mxu3 %v2111_v9  ;;  %963 = vmatpush.msrb.mxu1 %v962_v14 }
  0x92   :  { %1232 = vmatpush.msra.mxu2 %v1964_v36  ;;  %1096 = vmatpush.msra.mxu0 %v1980_v5 }
  0x93   :  { %1075 = vmatpush.msrb.mxu3 %v2125_v12  ;;  %1035 = vmatmul.f32.vlgmr.msrb.gmra.mxu2 %v2103_v26 }
  0x94   :  { %1233 = vmatpush.msra.mxu2 %v1980_v5  ;;  %1100 = vmatpush.msra.mxu0 %v1991_v34 }
  0x95   :  { %1248 = vmatpush.msra.mxu3 %v1927_v25  ;;  %969 = vmatpush.msrb.mxu1 %v968_v6 }
  0x96   :  { %1079 = vmatmul.f32.vlgmr.msrb.gmra.mxu3 %v865_v50  ;;  %1234 = vmatpush.msra.mxu2 %v1991_v34  ;;  %v1267_v34 = vld [vmem:[%s2242_s3] ss:$0 sm:$0xff] }
  0x97   :  { %1104 = vmatpush.msra.mxu0 %v2008_v13  ;;  %1249 = vmatpush.msra.mxu3 %v1937_v23 }
  0x98   :  { %975 = vmatpush.msrb.mxu1 %v974_v27  ;;  %876 = vmatmul.f32.gmra.mxu0 %v875_v19 }
  0x99   :  { %977 = vmatmul.f32.vlgmr.msrb.gmra.mxu1 %v2077_v33  ;;  %1235 = vmatpush.msra.mxu2 %v2008_v13 }
  0x9a   :  { %1108 = vmatpush.msra.mxu0 %v2013_v38  ;;  %1163 = vmatpush.msra.mxu1 %v1927_v25 }
  0x9b   :  { %1250 = vmatpush.msra.mxu3 %v1943_v3  ;;  %1236 = vmatpush.msra.mxu2 %v2013_v38 }
  0x9c   :  { %1112 = vmatpush.msra.mxu0 %v2033_v46  ;;  %1165 = vmatpush.msra.mxu1 %v1937_v23 }
  0x9d   :  { %1251 = vmatpush.msra.mxu3 %v1960_v59  ;;  %1040 = vmatmul.f32.gmra.mxu2 %v872_v18 }
  0x9e   :  { %1237 = vmatpush.msra.mxu2 %v2033_v46  ;;  %1116 = vmatpush.msra.mxu0 %v2042_v57 }
  0x9f   :  { %1167 = vmatpush.msra.mxu1 %v1943_v3  ;;  %1252 = vmatpush.msra.mxu3 %v1967_v47 }
  0xa0   :  { %1085 = vmatmul.f32.gmra.mxu3 %v873_v48  ;;  %1238 = vmatpush.msra.mxu2 %v2042_v57 }
  0xa1   :  { %1120 = vmatpush.msra.mxu0 %v2054_v55  ;;  %1169 = vmatpush.msra.mxu1 %v1960_v59 }
  0xa2   :  { %1253 = vmatpush.msra.mxu3 %v1984_v44  ;;  %981 = vmatmul.f32.gmra.mxu1 %v2127_v41 }
  0xa3   :  { %1239 = vmatpush.msra.mxu2 %v2054_v55  ;;  %1124 = vmatpush.msra.mxu0 %v2069_v7 }
  0xa4   :  { %1171 = vmatpush.msra.mxu1 %v1967_v47  ;;  %1254 = vmatpush.msra.mxu3 %v1995_v45 }
  0xa5   :  { %1240 = vmatpush.msra.mxu2 %v2069_v7  ;;  %1128 = vmatpush.msra.mxu0 %v2083_v15 }
  0xa6   :  { %1173 = vmatpush.msra.mxu1 %v1984_v44  ;;  %1255 = vmatpush.msra.mxu3 %v2001_v37 }
  0xa7   :  { %1241 = vmatpush.msra.mxu2 %v2083_v15  ;;  %1132 = vmatpush.msra.mxu0 %v2098_v22 }
  0xa8   :  { %1175 = vmatpush.msra.mxu1 %v1995_v45  ;;  %1256 = vmatpush.msra.mxu3 %v2021_v20 }
  0xa9   :  { %1242 = vmatpush.msra.mxu2 %v2098_v22  ;;  %1136 = vmatpush.msra.mxu0 %v2108_v53 }
  0xaa   :  { %1177 = vmatpush.msra.mxu1 %v2001_v37  ;;  %1257 = vmatpush.msra.mxu3 %v2036_v54 }
  0xab   :  { %1243 = vmatpush.msra.mxu2 %v2108_v53  ;;  %1140 = vmatpush.msra.mxu0 %v2120_v4 }
  0xac   :  { %1179 = vmatpush.msra.mxu1 %v2021_v20  ;;  %1258 = vmatpush.msra.mxu3 %v2050_v42 }
  0xad   :  { %1244 = vmatpush.msra.mxu2 %v2120_v4  ;;  %1144 = vmatpush.msra.mxu0 %v2133_v51 }
  0xae   :  { %1181 = vmatpush.msra.mxu1 %v2036_v54  ;;  %1259 = vmatpush.msra.mxu3 %v2064_v43 }
  0xaf   :  { %1245 = vmatpush.msra.mxu2 %v2133_v51  ;;  %1148 = vmatpush.msra.mxu0 %v2142_v58 }
  0xb0   :  { %1183 = vmatpush.msra.mxu1 %v2050_v42  ;;  %1260 = vmatpush.msra.mxu3 %v2072_v60 }
  0xb1   :  { %1246 = vmatpush.msra.mxu2 %v2142_v58  ;;  %1152 = vmatpush.msra.mxu0 %v2148_v52 }
  0xb2   :  { %1185 = vmatpush.msra.mxu1 %v2064_v43  ;;  %1261 = vmatpush.msra.mxu3 %v2089_v61 }
  0xb3   :  { %1154 = vmatmul.f32.vlgmr.msra.gmra.mxu0 %v2077_v33  ;;  %1247 = vmatpush.msra.mxu2 %v2148_v52 }
  0xb4   :  { %1187 = vmatpush.msra.mxu1 %v2072_v60  ;;  %1262 = vmatpush.msra.mxu3 %v2111_v9 }
  0xb5   :  { %1158 = vmatmul.f32.vlgmr.msra.gmra.mxu2 %v2127_v41 }
  0xb6   :  { %1189 = vmatpush.msra.mxu1 %v2089_v61  ;;  %1263 = vmatpush.msra.mxu3 %v2125_v12 }
  0xb7   :  { %1199 = vmatmul.f32.vlgmr.msra.gmra.mxu3 %v2127_v41 }
  0xb8   :  { %1191 = vmatpush.msra.mxu1 %v2111_v9 }
  0xba   :  { %1193 = vmatpush.msra.mxu1 %v2125_v12  ;;  %v125_v25 = vpop.f32.mrf.mxu0 }
  0xbb   :  { %1195 = vmatmul.f32.vlgmr.msra.gmra.mxu1 %v2077_v33  ;;  %v126_v13 = vadd.f32 %v1267_v34, %v125_v25 }
  0xbf   :  { %v234_v23 = vpop.f32.mrf.mxu1 }
  0xc0   :  { %v235_v54 = vadd.f32 %v234_v23, %v126_v13  ;;  %v1205_v23 = vld [vmem:[%s2240_s1] sm:$0xff] }
  0xc1   :  { %v292_v3 = vpop.f32.mrf.mxu2 }
  0xc2   :  { %v293_v43 = vadd.f32 %v292_v3, %v235_v54 }
  0xc3   :  { %v336_v59 = vpop.f32.mrf.mxu3 }
  0xc4   :  { %v337_v15 = vadd.f32 %v336_v59, %v293_v43 }
  0xc6   :  { %v133_v36 = vpop.f32.mrf.mxu0 }
  0xc7   :  { %v134_v38 = vadd.f32 %v1267_v34, %v133_v36 }
  0xca   :  { %v238_v47 = vpop.f32.mrf.mxu1  ;;  %v297_v5 = vpop.f32.mrf.mxu2 }
  0xcb   :  { %v239_v57 = vadd.f32 %v238_v47, %v134_v38 }
  0xcd   :  { %v342_v44 = vpop.f32.mrf.mxu3  ;;  %v298_v7 = vadd.f32 %v297_v5, %v239_v57  ;;  %v1206_v5 = vld [vmem:[%s2240_s1 + $0x8] sm:$0xff]  ;;  %s1295_s1 = smov 128  }
  0xcf   :  { %v343_v61 = vadd.f32 %v342_v44, %v298_v7 }
  0xd0   :  { %v411_v45 = vpop.f32.mrf.mxu0 }
  0xd1   :  { %v412_v26 = vadd.f32 %v411_v45, %v337_v15  ;;  %v1207_v45 = vmul.f32 0.1, %v1205_v23 }
  0xd3   :  { %v452_v37 = vpop.f32.mrf.mxu1 }
  0xd4   :  { %v497_v20 = vpop.f32.mrf.mxu2  ;;  %v453_v17 = vadd.f32 %v452_v37, %v412_v26 }
  0xd6   :  { %v498_v28 = vadd.f32 %v497_v20, %v453_v17  ;;  %v1208_v20 = vmul.f32 0.1, %v1206_v5 }
  0xd7   :  { %v606_v46 = vpop.f32.mrf.mxu3 }
  0xd8   :  { %v607_v40 = vadd.f32 %v606_v46, %v498_v28 }
  0xde   :  { %v415_v42 = vpop.f32.mrf.mxu0 }
  0xdf   :  { %v416_v2 = vadd.f32 %v415_v42, %v343_v61 }
  0xe7   :  { %v456_v55 = vpop.f32.mrf.mxu1 }
  0xe8   :  { %v505_v60 = vpop.f32.mrf.mxu2  ;;  %v664_v22 = vpop.f32.mrf.mxu0  ;;  %v457_v9 = vadd.f32 %v456_v55, %v416_v2 }
  0xe9   :  { %v665_v41 = vadd.f32 %v664_v22, %v607_v40 }
  0xea   :  { %v506_v11 = vadd.f32 %v505_v60, %v457_v9 }
  0xeb   :  { %v610_v33 = vpop.f32.mrf.mxu3 }
  0xec   :  { %v611_v50 = vadd.f32 %v610_v33, %v506_v11 }
  0xf2   :  { %v708_v8 = vpop.f32.mrf.mxu1  ;;  %v783_v53 = vpop.f32.mrf.mxu2 }
  0xf3   :  { %v709_v10 = vadd.f32 %v708_v8, %v665_v41 }
  0xf5   :  { %v824_v24 = vpop.f32.mrf.mxu3  ;;  %v784_v0 = vadd.f32 %v783_v53, %v709_v10 }
  0xf6   :  { %v669_v21 = vpop.f32.mrf.mxu0 }
  0xf7   :  { %v670_v51 = vadd.f32 %v669_v21, %v611_v50  ;;  %v825_v58 = vadd.f32 %v824_v24, %v784_v0 }
  0xfb   :  { %v714_v4 = vpop.f32.mrf.mxu1 }
  0xfc   :  { %v787_v12 = vpop.f32.mrf.mxu2  ;;  %v715_v63 = vadd.f32 %v714_v4, %v670_v51 }
  0xfe   :  { %v788_v18 = vadd.f32 %v787_v12, %v715_v63 }
  0xff   :  { %v828_v49 = vpop.f32.mrf.mxu3 }
 0x100   :  { %v829_v39 = vadd.f32 %v828_v49, %v788_v18 }
 0x10c   :  { %v869_v1 = vpop.f32.mrf.mxu0 }
 0x10d   :  { %v870_v29 = vadd.f32 %v869_v1, %v825_v58 }
 0x115   :  { %v877_v32 = vpop.f32.mrf.mxu0 }
 0x116   :  { %v978_v16 = vpop.f32.mrf.mxu1  ;;  %v1036_v56 = vpop.f32.mrf.mxu2  ;;  %v878_v48 = vadd.f32 %v877_v32, %v829_v39 }
 0x117   :  { %v979_v62 = vadd.f32 %v978_v16, %v870_v29 }
 0x119   :  { %v1080_v31 = vpop.f32.mrf.mxu3  ;;  %v1037_v30 = vadd.f32 %v1036_v56, %v979_v62 }
 0x11b   :  { %v1081_v25 = vadd.f32 %v1080_v31, %v1037_v30 }
 0x11f   :  { %v982_v52 = vpop.f32.mrf.mxu1 }
 0x120   :  { %v983_v14 = vadd.f32 %v982_v52, %v878_v48  ;;  %v1041_v35 = vpop.f32.mrf.mxu2 }
 0x122   :  { %v1042_v27 = vadd.f32 %v1041_v35, %v983_v14 }
 0x123   :  { %v1086_v6 = vpop.f32.mrf.mxu3 }
 0x124   :  { %v1087_v3 = vadd.f32 %v1086_v6, %v1042_v27 }
 0x130   :  { %v1155_v19 = vpop.f32.mrf.mxu0 }
 0x131   :  { %v1156_v59 = vadd.f32 %v1155_v19, %v1081_v25 }
 0x138   :  { %v1159_v36 = vpop.f32.mrf.mxu2  ;;  %v1196_v47 = vpop.f32.mrf.mxu1 }
 0x139   :  { %v1160_v44 = vadd.f32 %v1159_v36, %v1087_v3  ;;  %v1197_v34 = vadd.f32 %v1196_v47, %v1156_v59 }
 0x13a   :  { %v1200_v37 = vpop.f32.mrf.mxu3 }
 0x13b   :  { %v1203_v13 = vmul.f32 0.9, %v1197_v34  ;;  %v1201_v38 = vadd.f32 %v1200_v37, %v1160_v44 }
 0x13d   :  { %v1209_v46 = vadd.f32 %v1207_v45, %v1203_v13  ;;  %v1204_v54 = vmul.f32 0.9, %v1201_v38 }
 0x13f   :  { %1212 = vst.msk [vmem:[#allocation2] sm:$0xff] %vm1211_vm2, %v1209_v46  ;;  %v1210_v57 = vadd.f32 %v1208_v20, %v1204_v54 }
 0x141   :  { %1213 = vst.msk [vmem:[#allocation2 + $0x8] sm:$0xff] %vm1211_vm2, %v1210_v57 }
 0x142   :  { %1226 = dma.vmem_to_hbm [thread:$0]  %s1219_s23, 256, %s1221_s26, [#allocation3], %s1295_s1, %s1295_s1, %s1296_s27  }
 0x143   :  { %1292 = dma.done.wait [#allocation3], 256  }
 0x144   :  { %1293 = vsyncadd [#allocation3], 4294967040 }
 0x145   :  { %1231 = vsyncpa [#allocation3], 1 }

</bundles_post_ra>
